<compile_context>
chip_gen: v7x
topology: tpu7x:2x2x1
jax: 0.10.0
libtpu: 0.0.40
codegen_flags: <defaults>
</compile_context>

<pallas_src>
import functools

import jax
import jax.numpy as jnp
from jax.experimental import pallas as pl
from jax.experimental.pallas import tpu as pltpu

EPS = 1e-6

# Below this many bytes of activations, skip Pallas entirely.
_MIN_PALLAS_BYTES = 256 * 1024


def _encoder_norm_kernel(scale_ref, beta_ref, x_ref, o_ref):
    # scale_ref: (1,) SMEM scalar holding alpha / eps
    # beta_ref:  (1,) SMEM scalar
    # x_ref/o_ref: (TILE_R, D) VMEM tiles; the reduction over D stays in-tile.
    scale = scale_ref[0]
    beta = beta_ref[0]

    x = x_ref[...].astype(jnp.float32)
    d = x.shape[-1]

    # Two-pass statistics (numerically safer than sum/sumsq fusion given the
    # 1e6 output scaling).  torch.std default: unbiased (ddof=1) -> D must be
    # >= 2 for a finite result, exactly like the PyTorch reference.
    mean = jnp.mean(x, axis=-1, keepdims=True)
    diff = x - mean
    var = jnp.sum(diff * diff, axis=-1, keepdims=True) / jnp.float32(d - 1)

    # alpha * diff / (std * eps) + beta  ==  diff * (alpha/eps) * rsqrt(var) + beta
    # Exact rsqrt (not approx): outputs are scaled by 1/eps = 1e6.
    # NOTE: padded rows of a partial last block produce rsqrt(0) -> inf/nan,
    # which Pallas masks out on store (never written to HBM).
    row_scale = jax.lax.rsqrt(var) * scale  # (TILE_R, 1)

    o_ref[...] = (diff * row_scale + beta).astype(o_ref.dtype)


def _vmem_budget_bytes() -> int:
    """Generation-aware scoped-VMEM budget for this kernel."""
    try:
        cap = pltpu.get_tpu_info().vmem_capacity_bytes
    except Exception:  # pragma: no cover - conservative fallback (v7x-sized)
        cap = 64 * 1024 * 1024
    # ~1/3 of physical VMEM, clamped: v7x (64 MiB) -> ~21 MiB (keeps headroom
    # for double-buffering + internal scratch), v5e/v6e (128 MiB) -> ~43 MiB.
    return max(16 * 1024 * 1024, min(cap // 3, 48 * 1024 * 1024))


def _choose_tile_rows(rows: int, d: int, vmem_budget: int) -> int:
    """Row-tile size targeted by bytes (not a row cap).

    Aims for ~2-4 MiB per buffer so per-grid-step overhead (~0.35us) is
    amortized regardless of D, while 2 in-buffers + 2 out-buffers plus f32
    temporaries stay well inside the scoped-VMEM budget on every generation.
    """
    per_buffer = min(4 * 1024 * 1024, vmem_budget // 6)
    # Size by f32 element bytes regardless of the I/O dtype, since the kernel
    # computes in f32 (covers bf16 inputs whose temporaries are 2x wider).
    tile = per_buffer // (d * 4)
    tile = max(8, (tile // 8) * 8)  # sublane-aligned
    if rows <= tile:
        return rows  # full-extent block (always a legal block shape)
    return tile


def _layernorm_jax(x, alpha, beta):
    """Pure-JAX path for degenerate sizes (identical math to the kernel)."""
    xf = x.astype(jnp.float32)
    mean = jnp.mean(xf, axis=-1, keepdims=True)
    std = jnp.std(xf, axis=-1, keepdims=True, ddof=1)
    out = alpha[0] * (xf - mean) / (std * jnp.float32(EPS)) + beta[0]
    return out.astype(x.dtype)


@functools.partial(jax.jit, static_argnames=("tile_rows", "min_pallas_bytes"))
def encoder_forward(x, mask, alpha, beta, *, tile_rows=None,
                    min_pallas_bytes=_MIN_PALLAS_BYTES):
    """Encoder.forward: apply layers (empty -> identity) then LayerNormalization.

    x: (B, S, D).  `mask` is accepted for API parity but unused because the
    layer stack is empty.
    """
    # TODO(synk): `self.layers` is an arbitrary nn.ModuleList supplied at
    # construction time; no concrete layer class is specified, so it is
    # treated as an empty stack (identity) and only the final norm is fused.
    del mask
    B, S, D = x.shape
    rows = B * S

    # Degenerate sizes: custom-call + single-step-grid overhead dwarfs the
    # work; XLA's fused elementwise path is faster there.
    if rows * D * x.dtype.itemsize < min_pallas_bytes:
        return _layernorm_jax(x, alpha, beta)

    x2d = x.reshape(rows, D)

    vmem_budget = _vmem_budget_bytes()
    if tile_rows is None:
        tile_r = _choose_tile_rows(rows, D, vmem_budget)
    else:
        tile_r = min(rows, max(8, (int(tile_rows) // 8) * 8))
    grid = (pl.cdiv(rows, tile_r),)

    # Fold alpha and 1/eps into a single scalar once, outside the kernel.
    scale = (alpha / jnp.float32(EPS)).astype(jnp.float32)
    beta_s = beta.astype(jnp.float32)

    out2d = pl.pallas_call(
        _encoder_norm_kernel,
        out_shape=jax.ShapeDtypeStruct((rows, D), x.dtype),
        grid_spec=pltpu.PrefetchScalarGridSpec(
            num_scalar_prefetch=0,
            grid=grid,
            in_specs=[
                pl.BlockSpec(memory_space=pltpu.MemorySpace.SMEM),   # alpha/eps
                pl.BlockSpec(memory_space=pltpu.MemorySpace.SMEM),   # beta
                pl.BlockSpec((tile_r, D), lambda i: (i, 0)),         # x tile
            ],
            out_specs=pl.BlockSpec((tile_r, D), lambda i: (i, 0)),
        ),
        compiler_params=pltpu.CompilerParams(
            # Row tiles are fully independent.
            dimension_semantics=("parallel",),
            # Let the larger-VMEM generations actually use their VMEM while
            # keeping headroom on v7x.
            vmem_limit_bytes=int(vmem_budget),
        ),
    )(scale, beta_s, x2d)

    return out2d.reshape(B, S, D)


def _reference(x, alpha, beta):
    mean = jnp.mean(x, axis=-1, keepdims=True)
    std = jnp.std(x, axis=-1, keepdims=True, ddof=1)
    return alpha[0] * (x - mean) / (std * EPS) + beta[0]


if __name__ == "__main__":
    key = jax.random.PRNGKey(0)
    k1, k2, k3 = jax.random.split(key, 3)

    # nn.Parameter(torch.ones(1)) / nn.Parameter(torch.zeros(1))
    alpha = jnp.ones((1,), dtype=jnp.float32)
    beta = jnp.zeros((1,), dtype=jnp.float32)

    # Case 1: Pallas path, explicit small tile -> multi-step grid with a
    # partial last block (exercises pipelining + masked tail writes).
    B, S, D = 2, 300, 128
    x = jax.random.normal(k1, (B, S, D), dtype=jnp.float32)
    mask = jnp.ones((B, 1, S, S), dtype=jnp.float32)  # unused (empty layers)
    out = encoder_forward(x, mask, alpha, beta, tile_rows=256)
    out = jax.block_until_ready(out)
    ref = _reference(x, alpha, beta)
    assert out.shape == (B, S, D)
    assert jnp.allclose(out, ref, rtol=1e-4, atol=1e-2), float(
        jnp.max(jnp.abs(out - ref))
    )

    # Case 2: Pallas path with the default byte-targeted tile (full-extent
    # single block at this size).
    B2, S2, D2 = 2, 384, 256
    x2 = jax.random.normal(k2, (B2, S2, D2), dtype=jnp.float32)
    mask2 = jnp.ones((B2, 1, S2, S2), dtype=jnp.float32)
    out2 = jax.block_until_ready(encoder_forward(x2, mask2, alpha, beta))
    ref2 = _reference(x2, alpha, beta)
    assert jnp.allclose(out2, ref2, rtol=1e-4, atol=1e-2), float(
        jnp.max(jnp.abs(out2 - ref2))
    )

    # Case 3: tiny input -> pure-JAX bypass (launch overhead not worth it).
    B3, S3, D3 = 2, 8, 32
    x3 = jax.random.normal(k3, (B3, S3, D3), dtype=jnp.float32)
    mask3 = jnp.ones((B3, 1, S3, S3), dtype=jnp.float32)
    out3 = jax.block_until_ready(encoder_forward(x3, mask3, alpha, beta))
    ref3 = _reference(x3, alpha, beta)
    assert jnp.allclose(out3, ref3, rtol=1e-4, atol=1e-2), float(
        jnp.max(jnp.abs(out3 - ref3))
    )

    print("KERNEL_OK")
</pallas_src>

<mosaic_0001>
module attributes {stable_mosaic.version = 11 : i64} {
  func.func @_encoder_norm_kernel(%arg0: i32, %arg1: memref<1xf32, #tpu.memory_space<smem>>, %arg2: memref<1xf32, #tpu.memory_space<smem>>, %arg3: memref<256x128xf32, #tpu.memory_space<vmem>>, %arg4: memref<256x128xf32, #tpu.memory_space<vmem>>) attributes {dimension_semantics = [#tpu.dimension_semantics<parallel>], iteration_bounds = array<i64: 3>, scalar_prefetch = 0 : i64, scratch_operands = 0 : i64, tpu.core_type = #tpu.core_type<tc>, window_params = [{transform_indices = @transform_0, window_bounds = array<i64: 1>}, {transform_indices = @transform_1, window_bounds = array<i64: 1>}, {transform_indices = @transform_2, window_bounds = array<i64: 256, 128>}, {transform_indices = @transform_3, window_bounds = array<i64: 256, 128>}]} {
    %c0 = arith.constant 0 : index
    %0 = memref.load %arg1[%c0] : memref<1xf32, #tpu.memory_space<smem>>
    %c0_0 = arith.constant 0 : index
    %1 = memref.load %arg2[%c0_0] : memref<1xf32, #tpu.memory_space<smem>>
    %c0_1 = arith.constant 0 : index
    %c0_2 = arith.constant 0 : index
    %2 = vector.load %arg3[%c0_1, %c0_2] : memref<256x128xf32, #tpu.memory_space<vmem>>, vector<256x128xf32>
    %cst = arith.constant dense<0.000000e+00> : vector<256xf32>
    %3 = vector.multi_reduction <add>, %2, %cst [1] : vector<256x128xf32> to vector<256xf32>
    %4 = vector.shape_cast %3 : vector<256xf32> to vector<256x1xf32>
    %cst_3 = arith.constant 1.280000e+02 : f32
    %5 = vector.broadcast %cst_3 : f32 to vector<256x1xf32>
    %6 = arith.divf %4, %5 : vector<256x1xf32>
    %7 = vector.broadcast %6 : vector<256x1xf32> to vector<256x128xf32>
    %8 = arith.subf %2, %7 : vector<256x128xf32>
    %9 = arith.mulf %8, %8 : vector<256x128xf32>
    %cst_4 = arith.constant dense<0.000000e+00> : vector<256xf32>
    %10 = vector.multi_reduction <add>, %9, %cst_4 [1] : vector<256x128xf32> to vector<256xf32>
    %11 = vector.shape_cast %10 : vector<256xf32> to vector<256x1xf32>
    %cst_5 = arith.constant 1.270000e+02 : f32
    %12 = vector.broadcast %cst_5 : f32 to vector<256x1xf32>
    %13 = arith.divf %11, %12 : vector<256x1xf32>
    %14 = math.rsqrt %13 : vector<256x1xf32>
    %15 = vector.broadcast %0 : f32 to vector<256x1xf32>
    %16 = arith.mulf %14, %15 : vector<256x1xf32>
    %17 = vector.broadcast %16 : vector<256x1xf32> to vector<256x128xf32>
    %18 = arith.mulf %8, %17 : vector<256x128xf32>
    %19 = vector.broadcast %1 : f32 to vector<256x128xf32>
    %20 = arith.addf %18, %19 : vector<256x128xf32>
    %c0_6 = arith.constant 0 : index
    %c0_7 = arith.constant 0 : index
    %21 = vector.load %arg4[%c0_6, %c0_7] : memref<256x128xf32, #tpu.memory_space<vmem>>, vector<256x128xf32>
    tpu.vector_store %arg4[%c0_6, %c0_7], %20 {strides = array<i32>} : memref<256x128xf32, #tpu.memory_space<vmem>>, vector<256x128xf32>,
    return
  }
  func.func @transform_0(%arg0: i32) -> i32 {
    %c0_i32 = arith.constant 0 : i32
    %c0_i32_0 = arith.constant 0 : i32
    return %c0_i32 : i32
  }
  func.func @transform_1(%arg0: i32) -> i32 {
    %c0_i32 = arith.constant 0 : i32
    %c0_i32_0 = arith.constant 0 : i32
    return %c0_i32 : i32
  }
  func.func @transform_2(%arg0: i32) -> (i32, i32) {
    %c0_i32 = arith.constant 0 : i32
    %c0_i32_0 = arith.constant 0 : i32
    return %arg0, %c0_i32 : i32, i32
  }
  func.func @transform_3(%arg0: i32) -> (i32, i32) {
    %c0_i32 = arith.constant 0 : i32
    %c0_i32_0 = arith.constant 0 : i32
    return %arg0, %c0_i32 : i32, i32
  }
}

</mosaic_0001>

<bundles_post_ra>
// kernel: encoder_forward.1
= control target key start
LH: loop header
LB: loop body
LE: loop exit
PB: predicated region body
PF: predicated region fallthrough
CT: control target
= control target key end

     0   :  { %s1881_s0 = inlined_call_operand.<no memory space> [shape: f32[1], index: 0, kind: input, shape index: {}]   ;;  %s1882_s1 = inlined_call_operand.<no memory space> [shape: f32[1], index: 1, kind: input, shape index: {}]   ;;  %s1883_s2 = inlined_call_operand.vmem [shape: f32[600,128], index: 2, kind: input, shape index: {}]   ;;  %s1884_s3 = inlined_call_operand.vmem [shape: f32[600,128], index: 3, kind: output, shape index: {}]  }
   0x1   :  { %8 = sst [smem:[#allocation2]] %s1881_s0 }
   0x2   :  { %9 = sst [smem:[#allocation3]] %s1882_s1 }
   0x3   :  { %s1280_s16 = smov 0   ;;  %s1282_s17 = smov 0  }
   0x4   :  { %s1284_s18 = smov 0  }
   0x5 LB: > { %s1293_s0 = sadd.s32 4294967295, %s1220_s18   ;;  %s1295_s1 = sadd.s32 1, %s1220_s18   ;;  %s1220_s18 = sphi %s1284_s18, %s1893_s18   ;;  %s1216_s17 = sphi %s1282_s17, %s1892_s17   ;;  %s1212_s16 = sphi %s1280_s16, %s1891_s16  }
   0x6   : > { %s87_s19 = ssub.s32 %s1220_s18, %s1295_s1  ;;  %s90_s20 = sadd.s32 1, %s1216_s17 }
   0x7   : > { %p88_p0 = scmp.eq.s32.totalorder %s87_s19, 0  ;;  %p100_p1 = scmp.ne.s32.totalorder %s1216_s17, %s1212_s16 }
   0x8   : > { %p101_p2 = scmp.eq.s32.totalorder %s1293_s0, 2  ;;  %p990_p3 = scmp.ge.s32.totalorder %s1220_s18, 1 }
   0x9   : > { %s1303_s21 = scalar_select %p88_p0, %s1216_s17, %s90_s20  }
   0xa   : > { %p1305_p4 = por %p101_p2, %p100_p1  ;;  %p148_p5 = scmp.lt.s32.totalorder %s1220_s18, 4 }
   0xc   : > { %p149_p6 = pnand %p990_p3, %p148_p5 }
   0xd   : > { %s1310_s23 = sshll.u32 (!%p149_p6), %s1293_s0, 5  ;;  %s194_s29 = sld [smem:[#allocation2]] (!%p149_p6) }
   0xe   : > { %152 = sbr.rel (%p149_p6) target bundleno = 456 (0x1c8), region = 32  ;;  %p180_p7 = scmp.lt.s32.totalorder (!%p149_p6), %s1310_s23, 74 }
   0xf   : > { %s195_s30 = sld [smem:[#allocation3]] (!%p149_p6)  ;;  %s172_s4 = sand.u32 (!%p149_p6), 1, %s1212_s16  }
  0x10   : > { %s991_s5 = sshll.u32 (!%p149_p6), %s172_s4, 8 }
  0x11   : > { %s1617_s6 = scalar_lea.vmem (!%p149_p6), [#allocation4], %s991_s5  }
  0x15   : > { %s181_s24 = scalar_select %p180_p7, %s1310_s23, 74 }
  0x16   : > { %s656_s7 = ssub.s32 (%p1305_p4), 75, %s1310_s23  ;;  %s1011_s8 = sshll.u32 (%p1305_p4), %s1293_s0, 8 }
  0x17   : > { %s993_s25 = sshll.u32 %s181_s24, 3  ;;  %p657_p8 = scmp.lt.s32.totalorder (%p1305_p4), %s656_s7, 32 }
  0x18   : > { %s1317_s28 = scalar_lea.vmem %s1883_s2, %s993_s25  ;;  %s1749_s11 = scalar_lea.vmem (%p1305_p4), %s1884_s3, %s1011_s8  }
  0x19   : > { %v1320_v0 = vld [vmem:[%s1317_s28] sm:$0xff]  ;;  %v1323_v1 = vld [vmem:[%s1317_s28 + $0x10] sm:$0xff]  ;;  %v1328_v2 = vld [vmem:[%s1317_s28 + $0x8] sm:$0xff] }
  0x1a   : > { %228 = vadd.xlane.f32.xlu0 %v1320_v0  ;;  %232 = vadd.xlane.f32.xlu1 %v1323_v1  ;;  %v1331_v3 = vld [vmem:[%s1317_s28 + $0x18] sm:$0xff]  ;;  %v1336_v4 = vld [vmem:[%s1317_s28 + $0x20] sm:$0xff]  ;;  %v1339_v5 = vld [vmem:[%s1317_s28 + $0x28] sm:$0xff] }
  0x1b   : > { %v1344_v6 = vld [vmem:[%s1317_s28 + $0x30] sm:$0xff]  ;;  %v1347_v7 = vld [vmem:[%s1317_s28 + $0x38] sm:$0xff]  ;;  %v1352_v8 = vld [vmem:[%s1317_s28 + $0x40] sm:$0xff] }
  0x1c   : > { %v1355_v9 = vld [vmem:[%s1317_s28 + $0x48] sm:$0xff]  ;;  %v1360_v10 = vld [vmem:[%s1317_s28 + $0x50] sm:$0xff]  ;;  %v1363_v11 = vld [vmem:[%s1317_s28 + $0x58] sm:$0xff] }
  0x1d   : > { %v1368_v12 = vld [vmem:[%s1317_s28 + $0x60] sm:$0xff]  ;;  %v1371_v13 = vld [vmem:[%s1317_s28 + $0x68] sm:$0xff]  ;;  %v1376_v14 = vld [vmem:[%s1317_s28 + $0x70] sm:$0xff] }
  0x1e   : > { %230 = vadd.xlane.f32.xlu0 %v1328_v2  ;;  %234 = vadd.xlane.f32.xlu1 %v1331_v3  ;;  %v1379_v15 = vld [vmem:[%s1317_s28 + $0x78] sm:$0xff]  ;;  %v1384_v16 = vld [vmem:[%s1317_s28 + $0x80] sm:$0xff]  ;;  %v1387_v17 = vld [vmem:[%s1317_s28 + $0x88] sm:$0xff] }
  0x1f   : > { %v1392_v18 = vld [vmem:[%s1317_s28 + $0x90] sm:$0xff]  ;;  %v1395_v19 = vld [vmem:[%s1317_s28 + $0x98] sm:$0xff]  ;;  %v1400_v20 = vld [vmem:[%s1317_s28 + $0xa0] sm:$0xff] }
  0x20   : > { %v1403_v21 = vld [vmem:[%s1317_s28 + $0xa8] sm:$0xff]  ;;  %v1408_v22 = vld [vmem:[%s1317_s28 + $0xb0] sm:$0xff]  ;;  %v1411_v23 = vld [vmem:[%s1317_s28 + $0xb8] sm:$0xff] }
  0x21   : > { %v1416_v24 = vld [vmem:[%s1317_s28 + $0xc0] sm:$0xff]  ;;  %v1419_v25 = vld [vmem:[%s1317_s28 + $0xc8] sm:$0xff]  ;;  %v1424_v26 = vld [vmem:[%s1317_s28 + $0xd0] sm:$0xff] }
  0x22   : > { %236 = vadd.xlane.f32.xlu0 %v1336_v4  ;;  %238 = vadd.xlane.f32.xlu1 %v1339_v5  ;;  %v1427_v27 = vld [vmem:[%s1317_s28 + $0xd8] sm:$0xff]  ;;  %v1432_v28 = vld [vmem:[%s1317_s28 + $0xe0] sm:$0xff]  ;;  %v1435_v29 = vld [vmem:[%s1317_s28 + $0xe8] sm:$0xff] }
  0x23   : > { %v1440_v30 = vld [vmem:[%s1317_s28 + $0xf0] sm:$0xff]  ;;  %v1443_v31 = vld [vmem:[%s1317_s28 + $0xf8] sm:$0xff] }
  0x26   : > { %240 = vadd.xlane.f32.xlu0 %v1344_v6  ;;  %242 = vadd.xlane.f32.xlu1 %v1347_v7 }
  0x2a   : > { %244 = vadd.xlane.f32.xlu0 %v1352_v8  ;;  %246 = vadd.xlane.f32.xlu1 %v1355_v9 }
  0x2e   : > { %248 = vadd.xlane.f32.xlu0 %v1360_v10  ;;  %250 = vadd.xlane.f32.xlu1 %v1363_v11 }
  0x32   : > { %252 = vadd.xlane.f32.xlu0 %v1368_v12  ;;  %254 = vadd.xlane.f32.xlu1 %v1371_v13 }
  0x36   : > { %256 = vadd.xlane.f32.xlu0 %v1376_v14  ;;  %258 = vadd.xlane.f32.xlu1 %v1379_v15 }
  0x3a   : > { %260 = vadd.xlane.f32.xlu0 %v1384_v16  ;;  %262 = vadd.xlane.f32.xlu1 %v1387_v17 }
  0x3e   : > { %264 = vadd.xlane.f32.xlu0 %v1392_v18  ;;  %266 = vadd.xlane.f32.xlu1 %v1395_v19 }
  0x42   : > { %268 = vadd.xlane.f32.xlu0 %v1400_v20  ;;  %270 = vadd.xlane.f32.xlu1 %v1403_v21 }
  0x46   : > { %272 = vadd.xlane.f32.xlu0 %v1408_v22  ;;  %274 = vadd.xlane.f32.xlu1 %v1411_v23 }
  0x4a   : > { %276 = vadd.xlane.f32.xlu0 %v1416_v24  ;;  %278 = vadd.xlane.f32.xlu1 %v1419_v25 }
  0x4e   : > { %280 = vadd.xlane.f32.xlu0 %v1424_v26  ;;  %282 = vadd.xlane.f32.xlu1 %v1427_v27 }
  0x52   : > { %284 = vadd.xlane.f32.xlu0 %v1432_v28  ;;  %286 = vadd.xlane.f32.xlu1 %v1435_v29 }
  0x56   : > { %288 = vadd.xlane.f32.xlu0 %v1440_v30  ;;  %290 = vadd.xlane.f32.xlu1 %v1443_v31 }
  0xa7   : > { %v229_v32 = vpop.xlane.xlu0 %228  ;;  %v233_v33 = vpop.xlane.xlu1 %232 }
  0xa8   : > { %v293_v34 = vmul.f32 0.0078125, %v229_v32  ;;  %v295_v35 = vmul.f32 0.0078125, %v233_v33 }
  0xaa   : > { %v1448_v36 = vsub.f32 %v1320_v0, %v293_v34  ;;  %v1451_v37 = vsub.f32 %v1323_v1, %v295_v35 }
  0xab   : > { %v231_v38 = vpop.xlane.xlu0 %230  ;;  %v235_v39 = vpop.xlane.xlu1 %234 }
  0xac   : > { %v294_v40 = vmul.f32 0.0078125, %v231_v38  ;;  %v357_v41 = vmul.f32 %v1448_v36, %v1448_v36  ;;  %v296_v42 = vmul.f32 0.0078125, %v235_v39  ;;  %v359_v45 = vmul.f32 %v1451_v37, %v1451_v37 }
  0xae   : > { %v1456_v43 = vsub.f32 %v1328_v2, %v294_v40  ;;  %389 = vadd.xlane.f32.xlu0 %v357_v41  ;;  %v1459_v44 = vsub.f32 %v1331_v3, %v296_v42 }
  0xaf   : > { %v237_v46 = vpop.xlane.xlu0 %236  ;;  %v239_v47 = vpop.xlane.xlu1 %238 }
  0xb0   : > { %v297_v48 = vmul.f32 0.0078125, %v237_v46  ;;  %v358_v49 = vmul.f32 %v1456_v43, %v1456_v43  ;;  %v298_v50 = vmul.f32 0.0078125, %v239_v47  ;;  %v360_v53 = vmul.f32 %v1459_v44, %v1459_v44 }
  0xb2   : > { %v1466_v51 = vsub.f32 %v1336_v4, %v297_v48  ;;  %393 = vadd.xlane.f32.xlu0 %v359_v45  ;;  %391 = vadd.xlane.f32.xlu1 %v358_v49  ;;  %v1469_v52 = vsub.f32 %v1339_v5, %v298_v50 }
  0xb3   : > { %v241_v54 = vpop.xlane.xlu0 %240  ;;  %v243_v55 = vpop.xlane.xlu1 %242 }
  0xb4   : > { %v299_v56 = vmul.f32 0.0078125, %v241_v54  ;;  %v361_v57 = vmul.f32 %v1466_v51, %v1466_v51  ;;  %v300_v58 = vmul.f32 0.0078125, %v243_v55  ;;  %v362_v61 = vmul.f32 %v1469_v52, %v1469_v52 }
  0xb6   : > { %v1476_v59 = vsub.f32 %v1344_v6, %v299_v56  ;;  %395 = vadd.xlane.f32.xlu1 %v360_v53  ;;  %397 = vadd.xlane.f32.xlu0 %v361_v57  ;;  %v1479_v60 = vsub.f32 %v1347_v7, %v300_v58 }
  0xb7   : > { %v245_v62 = vpop.xlane.xlu0 %244  ;;  %v247_v63 = vpop.xlane.xlu1 %246 }
  0xb8   : > { %v301_v0 = vmul.f32 0.0078125, %v245_v62  ;;  %v363_v1 = vmul.f32 %v1476_v59, %v1476_v59  ;;  %v302_v2 = vmul.f32 0.0078125, %v247_v63  ;;  %v364_v5 = vmul.f32 %v1479_v60, %v1479_v60 }
  0xba   : > { %v1486_v3 = vsub.f32 %v1352_v8, %v301_v0  ;;  %399 = vadd.xlane.f32.xlu1 %v362_v61  ;;  %401 = vadd.xlane.f32.xlu0 %v363_v1  ;;  %v1489_v4 = vsub.f32 %v1355_v9, %v302_v2 }
  0xbb   : > { %v249_v6 = vpop.xlane.xlu0 %248  ;;  %v251_v7 = vpop.xlane.xlu1 %250 }
  0xbc   : > { %v303_v32 = vmul.f32 0.0078125, %v249_v6  ;;  %v365_v33 = vmul.f32 %v1486_v3, %v1486_v3  ;;  %v304_v34 = vmul.f32 0.0078125, %v251_v7  ;;  %v366_v9 = vmul.f32 %v1489_v4, %v1489_v4 }
  0xbe   : > { %v1496_v35 = vsub.f32 %v1360_v10, %v303_v32  ;;  %403 = vadd.xlane.f32.xlu1 %v364_v5  ;;  %405 = vadd.xlane.f32.xlu0 %v365_v33  ;;  %v1499_v8 = vsub.f32 %v1363_v11, %v304_v34 }
  0xbf   : > { %v253_v38 = vpop.xlane.xlu0 %252  ;;  %v255_v39 = vpop.xlane.xlu1 %254 }
  0xc0   : > { %v305_v40 = vmul.f32 0.0078125, %v253_v38  ;;  %v367_v41 = vmul.f32 %v1496_v35, %v1496_v35  ;;  %v306_v42 = vmul.f32 0.0078125, %v255_v39  ;;  %v368_v11 = vmul.f32 %v1499_v8, %v1499_v8 }
  0xc2   : > { %v1506_v45 = vsub.f32 %v1368_v12, %v305_v40  ;;  %407 = vadd.xlane.f32.xlu1 %v366_v9  ;;  %409 = vadd.xlane.f32.xlu0 %v367_v41  ;;  %v1509_v10 = vsub.f32 %v1371_v13, %v306_v42 }
  0xc3   : > { %v257_v46 = vpop.xlane.xlu0 %256  ;;  %v259_v47 = vpop.xlane.xlu1 %258 }
  0xc4   : > { %v307_v48 = vmul.f32 0.0078125, %v257_v46  ;;  %v369_v49 = vmul.f32 %v1506_v45, %v1506_v45  ;;  %v308_v50 = vmul.f32 0.0078125, %v259_v47  ;;  %v370_v13 = vmul.f32 %v1509_v10, %v1509_v10 }
  0xc6   : > { %v1516_v53 = vsub.f32 %v1376_v14, %v307_v48  ;;  %411 = vadd.xlane.f32.xlu1 %v368_v11  ;;  %413 = vadd.xlane.f32.xlu0 %v369_v49  ;;  %v1519_v12 = vsub.f32 %v1379_v15, %v308_v50 }
  0xc7   : > { %v261_v54 = vpop.xlane.xlu0 %260  ;;  %v263_v55 = vpop.xlane.xlu1 %262 }
  0xc8   : > { %v309_v56 = vmul.f32 0.0078125, %v261_v54  ;;  %v371_v57 = vmul.f32 %v1516_v53, %v1516_v53  ;;  %v310_v58 = vmul.f32 0.0078125, %v263_v55  ;;  %v372_v15 = vmul.f32 %v1519_v12, %v1519_v12 }
  0xca   : > { %v1526_v61 = vsub.f32 %v1384_v16, %v309_v56  ;;  %415 = vadd.xlane.f32.xlu1 %v370_v13  ;;  %417 = vadd.xlane.f32.xlu0 %v371_v57  ;;  %v1529_v14 = vsub.f32 %v1387_v17, %v310_v58 }
  0xcb   : > { %v265_v62 = vpop.xlane.xlu0 %264  ;;  %v267_v63 = vpop.xlane.xlu1 %266 }
  0xcc   : > { %v311_v0 = vmul.f32 0.0078125, %v265_v62  ;;  %v373_v1 = vmul.f32 %v1526_v61, %v1526_v61  ;;  %v312_v2 = vmul.f32 0.0078125, %v267_v63  ;;  %v374_v17 = vmul.f32 %v1529_v14, %v1529_v14 }
  0xce   : > { %v1536_v5 = vsub.f32 %v1392_v18, %v311_v0  ;;  %419 = vadd.xlane.f32.xlu1 %v372_v15  ;;  %421 = vadd.xlane.f32.xlu0 %v373_v1  ;;  %v1539_v16 = vsub.f32 %v1395_v19, %v312_v2 }
  0xcf   : > { %v269_v6 = vpop.xlane.xlu0 %268  ;;  %v271_v7 = vpop.xlane.xlu1 %270 }
  0xd0   : > { %v313_v32 = vmul.f32 0.0078125, %v269_v6  ;;  %v375_v33 = vmul.f32 %v1536_v5, %v1536_v5  ;;  %v314_v34 = vmul.f32 0.0078125, %v271_v7  ;;  %v376_v19 = vmul.f32 %v1539_v16, %v1539_v16 }
  0xd2   : > { %v1546_v9 = vsub.f32 %v1400_v20, %v313_v32  ;;  %423 = vadd.xlane.f32.xlu1 %v374_v17  ;;  %425 = vadd.xlane.f32.xlu0 %v375_v33  ;;  %v1549_v18 = vsub.f32 %v1403_v21, %v314_v34 }
  0xd3   : > { %v273_v38 = vpop.xlane.xlu0 %272  ;;  %v275_v39 = vpop.xlane.xlu1 %274 }
  0xd4   : > { %v315_v40 = vmul.f32 0.0078125, %v273_v38  ;;  %v377_v41 = vmul.f32 %v1546_v9, %v1546_v9  ;;  %v316_v42 = vmul.f32 0.0078125, %v275_v39  ;;  %v378_v21 = vmul.f32 %v1549_v18, %v1549_v18 }
  0xd6   : > { %v1556_v11 = vsub.f32 %v1408_v22, %v315_v40  ;;  %427 = vadd.xlane.f32.xlu1 %v376_v19  ;;  %429 = vadd.xlane.f32.xlu0 %v377_v41  ;;  %v1559_v20 = vsub.f32 %v1411_v23, %v316_v42 }
  0xd7   : > { %v277_v46 = vpop.xlane.xlu0 %276  ;;  %v279_v47 = vpop.xlane.xlu1 %278 }
  0xd8   : > { %v317_v48 = vmul.f32 0.0078125, %v277_v46  ;;  %v379_v49 = vmul.f32 %v1556_v11, %v1556_v11  ;;  %v318_v50 = vmul.f32 0.0078125, %v279_v47  ;;  %v380_v23 = vmul.f32 %v1559_v20, %v1559_v20 }
  0xda   : > { %v1566_v13 = vsub.f32 %v1416_v24, %v317_v48  ;;  %431 = vadd.xlane.f32.xlu1 %v378_v21  ;;  %433 = vadd.xlane.f32.xlu0 %v379_v49  ;;  %v1569_v22 = vsub.f32 %v1419_v25, %v318_v50  ;;  %v1607_v50 = vstv %s194_s29 }
  0xdb   : > { %v281_v54 = vpop.xlane.xlu0 %280  ;;  %v283_v55 = vpop.xlane.xlu1 %282 }
  0xdc   : > { %v319_v56 = vmul.f32 0.0078125, %v281_v54  ;;  %v381_v57 = vmul.f32 %v1566_v13, %v1566_v13  ;;  %v320_v58 = vmul.f32 0.0078125, %v283_v55  ;;  %v382_v25 = vmul.f32 %v1569_v22, %v1569_v22 }
  0xde   : > { %v1576_v15 = vsub.f32 %v1424_v26, %v319_v56  ;;  %435 = vadd.xlane.f32.xlu1 %v380_v23  ;;  %437 = vadd.xlane.f32.xlu0 %v381_v57  ;;  %v1579_v24 = vsub.f32 %v1427_v27, %v320_v58 }
  0xdf   : > { %v285_v62 = vpop.xlane.xlu0 %284  ;;  %v287_v63 = vpop.xlane.xlu1 %286 }
  0xe0   : > { %v321_v0 = vmul.f32 0.0078125, %v285_v62  ;;  %v383_v1 = vmul.f32 %v1576_v15, %v1576_v15  ;;  %v322_v2 = vmul.f32 0.0078125, %v287_v63  ;;  %v384_v27 = vmul.f32 %v1579_v24, %v1579_v24 }
  0xe2   : > { %v1586_v17 = vsub.f32 %v1432_v28, %v321_v0  ;;  %439 = vadd.xlane.f32.xlu1 %v382_v25  ;;  %441 = vadd.xlane.f32.xlu0 %v383_v1  ;;  %v1589_v26 = vsub.f32 %v1435_v29, %v322_v2  ;;  %v1611_v25 = vstv %s195_s30 }
  0xe3   : > { %v289_v6 = vpop.xlane.xlu0 %288  ;;  %v291_v7 = vpop.xlane.xlu1 %290 }
  0xe4   : > { %v323_v32 = vmul.f32 0.0078125, %v289_v6  ;;  %v385_v33 = vmul.f32 %v1586_v17, %v1586_v17  ;;  %v324_v34 = vmul.f32 0.0078125, %v291_v7  ;;  %v386_v29 = vmul.f32 %v1589_v26, %v1589_v26 }
  0xe6   : > { %v1596_v19 = vsub.f32 %v1440_v30, %v323_v32  ;;  %443 = vadd.xlane.f32.xlu1 %v384_v27  ;;  %445 = vadd.xlane.f32.xlu0 %v385_v33  ;;  %v1599_v28 = vsub.f32 %v1443_v31, %v324_v34 }
  0xe8   : > { %v387_v38 = vmul.f32 %v1596_v19, %v1596_v19  ;;  %v388_v39 = vmul.f32 %v1599_v28, %v1599_v28 }
  0xea   : > { %447 = vadd.xlane.f32.xlu1 %v386_v29  ;;  %449 = vadd.xlane.f32.xlu0 %v387_v38 }
  0xee   : > { %451 = vadd.xlane.f32.xlu1 %v388_v39 }
 0x13b   : > { %v390_v40 = vpop.xlane.xlu0 %389 }
 0x13c   : > { %v454_v30 = vmul.f32 0.007874016, %v390_v40 }
 0x13e   : > { %1102 = vrsqrt.f32 %v454_v30 }
 0x13f   : > { %v392_v41 = vpop.xlane.xlu1 %391  ;;  %v394_v31 = vpop.xlane.xlu0 %393 }
 0x140   : > { %v455_v42 = vmul.f32 0.007874016, %v392_v41  ;;  %v456_v21 = vmul.f32 0.007874016, %v394_v31 }
 0x142   : > { %1104 = vrsqrt.f32 %v455_v42 }
 0x143   : > { %1106 = vrsqrt.f32 %v456_v21  ;;  %v396_v46 = vpop.xlane.xlu1 %395  ;;  %v398_v47 = vpop.xlane.xlu0 %397 }
 0x144   : > { %v457_v48 = vmul.f32 0.007874016, %v396_v46  ;;  %v458_v49 = vmul.f32 0.007874016, %v398_v47 }
 0x146   : > { %1108 = vrsqrt.f32 %v457_v48 }
 0x147   : > { %1110 = vrsqrt.f32 %v458_v49  ;;  %v400_v23 = vpop.xlane.xlu1 %399  ;;  %v402_v54 = vpop.xlane.xlu0 %401 }
 0x148   : > { %v1103_v55 = vpop.eup %1102  ;;  %v459_v56 = vmul.f32 0.007874016, %v400_v23  ;;  %v460_v57 = vmul.f32 0.007874016, %v402_v54 }
 0x149   : > { %v519_v58 = vmul.f32 %v1103_v55, %v1607_v50 }
 0x14a   : > { %1112 = vrsqrt.f32 %v459_v56 }
 0x14b   : > { %v551_v62 = vmul.f32 %v519_v58, %v1448_v36  ;;  %1114 = vrsqrt.f32 %v460_v57  ;;  %v404_v63 = vpop.xlane.xlu1 %403  ;;  %v406_v0 = vpop.xlane.xlu0 %405 }
 0x14c   : > { %v1105_v1 = vpop.eup %1104  ;;  %v461_v2 = vmul.f32 0.007874016, %v404_v63  ;;  %v462_v27 = vmul.f32 0.007874016, %v406_v0 }
 0x14d   : > { %v1107_v6 = vpop.eup %1106  ;;  %v584_v7 = vadd.f32 %v1611_v25, %v551_v62  ;;  %v520_v32 = vmul.f32 %v1105_v1, %v1607_v50 }
 0x14e   : > { %v521_v33 = vmul.f32 %v1107_v6, %v1607_v50  ;;  %1116 = vrsqrt.f32 %v461_v2 }
 0x14f   : > { %616 = vst [vmem:[%s1617_s6] sm:$0xff] %v584_v7  ;;  %v552_v36 = vmul.f32 %v520_v32, %v1456_v43  ;;  %1118 = vrsqrt.f32 %v462_v27  ;;  %v408_v34 = vpop.xlane.xlu1 %407  ;;  %v410_v29 = vpop.xlane.xlu0 %409 }
 0x150   : > { %v1109_v38 = vpop.eup %1108  ;;  %v553_v39 = vmul.f32 %v521_v33, %v1451_v37  ;;  %v463_v40 = vmul.f32 0.007874016, %v408_v34  ;;  %v464_v30 = vmul.f32 0.007874016, %v410_v29 }
 0x151   : > { %v1111_v41 = vpop.eup %1110  ;;  %v585_v31 = vadd.f32 %v1611_v25, %v552_v36  ;;  %v522_v42 = vmul.f32 %v1109_v38, %v1607_v50 }
 0x152   : > { %v586_v21 = vadd.f32 %v1611_v25, %v553_v39  ;;  %v523_v46 = vmul.f32 %v1111_v41, %v1607_v50  ;;  %1120 = vrsqrt.f32 %v463_v40 }
 0x153   : > { %617 = vst [vmem:[%s1617_s6 + $0x8] sm:$0xff] %v585_v31  ;;  %v554_v43 = vmul.f32 %v522_v42, %v1459_v44  ;;  %1122 = vrsqrt.f32 %v464_v30  ;;  %v412_v47 = vpop.xlane.xlu1 %411  ;;  %v414_v48 = vpop.xlane.xlu0 %413 }
 0x154   : > { %v1113_v37 = vpop.eup %1112  ;;  %618 = vst [vmem:[%s1617_s6 + $0x10] sm:$0xff] %v586_v21  ;;  %v555_v49 = vmul.f32 %v523_v46, %v1466_v51  ;;  %v465_v23 = vmul.f32 0.007874016, %v412_v47  ;;  %v466_v54 = vmul.f32 0.007874016, %v414_v48 }
 0x155   : > { %v1115_v55 = vpop.eup %1114  ;;  %v587_v56 = vadd.f32 %v1611_v25, %v554_v43  ;;  %v524_v57 = vmul.f32 %v1113_v37, %v1607_v50 }
 0x156   : > { %v588_v58 = vadd.f32 %v1611_v25, %v555_v49  ;;  %v525_v62 = vmul.f32 %v1115_v55, %v1607_v50  ;;  %1124 = vrsqrt.f32 %v465_v23 }
 0x157   : > { %619 = vst [vmem:[%s1617_s6 + $0x18] sm:$0xff] %v587_v56  ;;  %v556_v44 = vmul.f32 %v524_v57, %v1469_v52  ;;  %1126 = vrsqrt.f32 %v466_v54  ;;  %v416_v63 = vpop.xlane.xlu1 %415  ;;  %v418_v0 = vpop.xlane.xlu0 %417 }
 0x158   : > { %v1117_v51 = vpop.eup %1116  ;;  %620 = vst [vmem:[%s1617_s6 + $0x20] sm:$0xff] %v588_v58  ;;  %v557_v1 = vmul.f32 %v525_v62, %v1476_v59  ;;  %v467_v2 = vmul.f32 0.007874016, %v416_v63  ;;  %v468_v27 = vmul.f32 0.007874016, %v418_v0 }
 0x159   : > { %v1119_v6 = vpop.eup %1118  ;;  %v589_v7 = vadd.f32 %v1611_v25, %v556_v44  ;;  %v526_v32 = vmul.f32 %v1117_v51, %v1607_v50 }
 0x15a   : > { %v590_v33 = vadd.f32 %v1611_v25, %v557_v1  ;;  %v527_v36 = vmul.f32 %v1119_v6, %v1607_v50  ;;  %1128 = vrsqrt.f32 %v467_v2 }
 0x15b   : > { %621 = vst [vmem:[%s1617_s6 + $0x28] sm:$0xff] %v589_v7  ;;  %v558_v52 = vmul.f32 %v526_v32, %v1479_v60  ;;  %1130 = vrsqrt.f32 %v468_v27  ;;  %v420_v34 = vpop.xlane.xlu1 %419  ;;  %v422_v29 = vpop.xlane.xlu0 %421 }
 0x15c   : > { %v1121_v59 = vpop.eup %1120  ;;  %622 = vst [vmem:[%s1617_s6 + $0x30] sm:$0xff] %v590_v33  ;;  %v559_v38 = vmul.f32 %v527_v36, %v1486_v3  ;;  %v469_v39 = vmul.f32 0.007874016, %v420_v34  ;;  %v470_v40 = vmul.f32 0.007874016, %v422_v29 }
 0x15d   : > { %v1123_v30 = vpop.eup %1122  ;;  %v591_v41 = vadd.f32 %v1611_v25, %v558_v52  ;;  %v528_v31 = vmul.f32 %v1121_v59, %v1607_v50 }
 0x15e   : > { %v592_v42 = vadd.f32 %v1611_v25, %v559_v38  ;;  %v529_v21 = vmul.f32 %v1123_v30, %v1607_v50  ;;  %1132 = vrsqrt.f32 %v469_v39 }
 0x15f   : > { %623 = vst [vmem:[%s1617_s6 + $0x38] sm:$0xff] %v591_v41  ;;  %v560_v60 = vmul.f32 %v528_v31, %v1489_v4  ;;  %1134 = vrsqrt.f32 %v470_v40  ;;  %v424_v46 = vpop.xlane.xlu1 %423  ;;  %v426_v43 = vpop.xlane.xlu0 %425 }
 0x160   : > { %v1125_v3 = vpop.eup %1124  ;;  %624 = vst [vmem:[%s1617_s6 + $0x40] sm:$0xff] %v592_v42  ;;  %v561_v47 = vmul.f32 %v529_v21, %v1496_v35  ;;  %v471_v48 = vmul.f32 0.007874016, %v424_v46  ;;  %v472_v37 = vmul.f32 0.007874016, %v426_v43 }
 0x161   : > { %v1127_v49 = vpop.eup %1126  ;;  %v593_v23 = vadd.f32 %v1611_v25, %v560_v60  ;;  %v530_v54 = vmul.f32 %v1125_v3, %v1607_v50 }
 0x162   : > { %v594_v55 = vadd.f32 %v1611_v25, %v561_v47  ;;  %v531_v56 = vmul.f32 %v1127_v49, %v1607_v50  ;;  %1136 = vrsqrt.f32 %v471_v48 }
 0x163   : > { %625 = vst [vmem:[%s1617_s6 + $0x48] sm:$0xff] %v593_v23  ;;  %v562_v4 = vmul.f32 %v530_v54, %v1499_v8  ;;  %1138 = vrsqrt.f32 %v472_v37  ;;  %v428_v57 = vpop.xlane.xlu1 %427  ;;  %v430_v58 = vpop.xlane.xlu0 %429 }
 0x164   : > { %v1129_v35 = vpop.eup %1128  ;;  %626 = vst [vmem:[%s1617_s6 + $0x50] sm:$0xff] %v594_v55  ;;  %v563_v62 = vmul.f32 %v531_v56, %v1506_v45  ;;  %v473_v44 = vmul.f32 0.007874016, %v428_v57  ;;  %v474_v63 = vmul.f32 0.007874016, %v430_v58 }
 0x165   : > { %v1131_v0 = vpop.eup %1130  ;;  %v595_v51 = vadd.f32 %v1611_v25, %v562_v4  ;;  %v532_v1 = vmul.f32 %v1129_v35, %v1607_v50 }
 0x166   : > { %v596_v2 = vadd.f32 %v1611_v25, %v563_v62  ;;  %v533_v27 = vmul.f32 %v1131_v0, %v1607_v50  ;;  %1140 = vrsqrt.f32 %v473_v44 }
 0x167   : > { %627 = vst [vmem:[%s1617_s6 + $0x58] sm:$0xff] %v595_v51  ;;  %v564_v8 = vmul.f32 %v532_v1, %v1509_v10  ;;  %1142 = vrsqrt.f32 %v474_v63  ;;  %v432_v6 = vpop.xlane.xlu1 %431  ;;  %v434_v7 = vpop.xlane.xlu0 %433 }
 0x168   : > { %v1133_v45 = vpop.eup %1132  ;;  %628 = vst [vmem:[%s1617_s6 + $0x60] sm:$0xff] %v596_v2  ;;  %v565_v32 = vmul.f32 %v533_v27, %v1516_v53  ;;  %v475_v33 = vmul.f32 0.007874016, %v432_v6  ;;  %v476_v36 = vmul.f32 0.007874016, %v434_v7 }
 0x169   : > { %v1135_v52 = vpop.eup %1134  ;;  %v597_v34 = vadd.f32 %v1611_v25, %v564_v8  ;;  %v534_v29 = vmul.f32 %v1133_v45, %v1607_v50 }
 0x16a   : > { %v598_v59 = vadd.f32 %v1611_v25, %v565_v32  ;;  %v535_v38 = vmul.f32 %v1135_v52, %v1607_v50  ;;  %1144 = vrsqrt.f32 %v475_v33 }
 0x16b   : > { %629 = vst [vmem:[%s1617_s6 + $0x68] sm:$0xff] %v597_v34  ;;  %v566_v10 = vmul.f32 %v534_v29, %v1519_v12  ;;  %1146 = vrsqrt.f32 %v476_v36  ;;  %v436_v39 = vpop.xlane.xlu1 %435  ;;  %v438_v40 = vpop.xlane.xlu0 %437 }
 0x16c   : > { %v1137_v53 = vpop.eup %1136  ;;  %630 = vst [vmem:[%s1617_s6 + $0x70] sm:$0xff] %v598_v59  ;;  %v567_v30 = vmul.f32 %v535_v38, %v1526_v61  ;;  %v477_v41 = vmul.f32 0.007874016, %v436_v39  ;;  %v478_v31 = vmul.f32 0.007874016, %v438_v40 }
 0x16d   : > { %v1139_v42 = vpop.eup %1138  ;;  %v599_v21 = vadd.f32 %v1611_v25, %v566_v10  ;;  %v536_v60 = vmul.f32 %v1137_v53, %v1607_v50 }
 0x16e   : > { %v600_v46 = vadd.f32 %v1611_v25, %v567_v30  ;;  %v537_v43 = vmul.f32 %v1139_v42, %v1607_v50  ;;  %1148 = vrsqrt.f32 %v477_v41 }
 0x16f   : > { %631 = vst [vmem:[%s1617_s6 + $0x78] sm:$0xff] %v599_v21  ;;  %v568_v12 = vmul.f32 %v536_v60, %v1529_v14  ;;  %1150 = vrsqrt.f32 %v478_v31  ;;  %v440_v3 = vpop.xlane.xlu1 %439  ;;  %v442_v47 = vpop.xlane.xlu0 %441 }
 0x170   : > { %v1141_v61 = vpop.eup %1140  ;;  %632 = vst [vmem:[%s1617_s6 + $0x80] sm:$0xff] %v600_v46  ;;  %v569_v48 = vmul.f32 %v537_v43, %v1536_v5  ;;  %v479_v37 = vmul.f32 0.007874016, %v440_v3  ;;  %v480_v49 = vmul.f32 0.007874016, %v442_v47 }
 0x171   : > { %v1143_v23 = vpop.eup %1142  ;;  %v601_v54 = vadd.f32 %v1611_v25, %v568_v12  ;;  %v538_v55 = vmul.f32 %v1141_v61, %v1607_v50 }
 0x172   : > { %v602_v56 = vadd.f32 %v1611_v25, %v569_v48  ;;  %v539_v4 = vmul.f32 %v1143_v23, %v1607_v50  ;;  %1152 = vrsqrt.f32 %v479_v37 }
 0x173   : > { %633 = vst [vmem:[%s1617_s6 + $0x88] sm:$0xff] %v601_v54  ;;  %v570_v14 = vmul.f32 %v538_v55, %v1539_v16  ;;  %1154 = vrsqrt.f32 %v480_v49  ;;  %v444_v57 = vpop.xlane.xlu1 %443  ;;  %v446_v58 = vpop.xlane.xlu0 %445 }
 0x174   : > { %v1145_v5 = vpop.eup %1144  ;;  %634 = vst [vmem:[%s1617_s6 + $0x90] sm:$0xff] %v602_v56  ;;  %v571_v35 = vmul.f32 %v539_v4, %v1546_v9  ;;  %v481_v62 = vmul.f32 0.007874016, %v444_v57  ;;  %v482_v44 = vmul.f32 0.007874016, %v446_v58 }
 0x175   : > { %v1147_v63 = vpop.eup %1146  ;;  %v603_v0 = vadd.f32 %v1611_v25, %v570_v14  ;;  %v540_v51 = vmul.f32 %v1145_v5, %v1607_v50 }
 0x176   : > { %v604_v1 = vadd.f32 %v1611_v25, %v571_v35  ;;  %v541_v2 = vmul.f32 %v1147_v63, %v1607_v50  ;;  %1156 = vrsqrt.f32 %v481_v62 }
 0x177   : > { %635 = vst [vmem:[%s1617_s6 + $0x98] sm:$0xff] %v603_v0  ;;  %v572_v16 = vmul.f32 %v540_v51, %v1549_v18  ;;  %1158 = vrsqrt.f32 %v482_v44  ;;  %v448_v27 = vpop.xlane.xlu1 %447  ;;  %v450_v8 = vpop.xlane.xlu0 %449 }
 0x178   : > { %v1149_v9 = vpop.eup %1148  ;;  %636 = vst [vmem:[%s1617_s6 + $0xa0] sm:$0xff] %v604_v1  ;;  %v573_v6 = vmul.f32 %v541_v2, %v1556_v11  ;;  %v483_v7 = vmul.f32 0.007874016, %v448_v27  ;;  %v484_v45 = vmul.f32 0.007874016, %v450_v8 }
 0x179   : > { %v1151_v32 = vpop.eup %1150  ;;  %v605_v33 = vadd.f32 %v1611_v25, %v572_v16  ;;  %v542_v36 = vmul.f32 %v1149_v9, %v1607_v50 }
 0x17a   : > { %v606_v52 = vadd.f32 %v1611_v25, %v573_v6  ;;  %v543_v34 = vmul.f32 %v1151_v32, %v1607_v50  ;;  %1160 = vrsqrt.f32 %v483_v7 }
 0x17b   : > { %637 = vst [vmem:[%s1617_s6 + $0xa8] sm:$0xff] %v605_v33  ;;  %v574_v18 = vmul.f32 %v542_v36, %v1559_v20  ;;  %1162 = vrsqrt.f32 %v484_v45  ;;  %v452_v29 = vpop.xlane.xlu1 %451 }
 0x17c   : > { %v1153_v11 = vpop.eup %1152  ;;  %638 = vst [vmem:[%s1617_s6 + $0xb0] sm:$0xff] %v606_v52  ;;  %v575_v59 = vmul.f32 %v543_v34, %v1566_v13  ;;  %v485_v38 = vmul.f32 0.007874016, %v452_v29 }
 0x17d   : > { %v1155_v10 = vpop.eup %1154  ;;  %v607_v39 = vadd.f32 %v1611_v25, %v574_v18  ;;  %v544_v40 = vmul.f32 %v1153_v11, %v1607_v50 }
 0x17e   : > { %v608_v53 = vadd.f32 %v1611_v25, %v575_v59  ;;  %v545_v30 = vmul.f32 %v1155_v10, %v1607_v50  ;;  %1164 = vrsqrt.f32 %v485_v38 }
 0x17f   : > { %639 = vst [vmem:[%s1617_s6 + $0xb8] sm:$0xff] %v607_v39  ;;  %v576_v20 = vmul.f32 %v544_v40, %v1569_v22 }
 0x180   : > { %v1157_v41 = vpop.eup %1156  ;;  %640 = vst [vmem:[%s1617_s6 + $0xc0] sm:$0xff] %v608_v53  ;;  %v577_v13 = vmul.f32 %v545_v30, %v1576_v15 }
 0x181   : > { %v1159_v31 = vpop.eup %1158  ;;  %v609_v42 = vadd.f32 %v1611_v25, %v576_v20  ;;  %v546_v21 = vmul.f32 %v1157_v41, %v1607_v50 }
 0x182   : > { %v610_v60 = vadd.f32 %v1611_v25, %v577_v13  ;;  %v547_v46 = vmul.f32 %v1159_v31, %v1607_v50 }
 0x183   : > { %641 = vst [vmem:[%s1617_s6 + $0xc8] sm:$0xff] %v609_v42  ;;  %v578_v43 = vmul.f32 %v546_v21, %v1579_v24 }
 0x184   : > { %v1161_v12 = vpop.eup %1160  ;;  %642 = vst [vmem:[%s1617_s6 + $0xd0] sm:$0xff] %v610_v60  ;;  %v579_v22 = vmul.f32 %v547_v46, %v1586_v17 }
 0x185   : > { %v1163_v15 = vpop.eup %1162  ;;  %v611_v3 = vadd.f32 %v1611_v25, %v578_v43  ;;  %v548_v47 = vmul.f32 %v1161_v12, %v1607_v50 }
 0x186   : > { %v612_v61 = vadd.f32 %v1611_v25, %v579_v22  ;;  %v549_v48 = vmul.f32 %v1163_v15, %v1607_v50 }
 0x187   : > { %643 = vst [vmem:[%s1617_s6 + $0xd8] sm:$0xff] %v611_v3  ;;  %v580_v37 = vmul.f32 %v548_v47, %v1589_v26 }
 0x188   : > { %v1165_v24 = vpop.eup %1164  ;;  %644 = vst [vmem:[%s1617_s6 + $0xe0] sm:$0xff] %v612_v61  ;;  %v581_v49 = vmul.f32 %v549_v48, %v1596_v19 }
 0x189   : > { %v613_v17 = vadd.f32 %v1611_v25, %v580_v37  ;;  %v550_v23 = vmul.f32 %v1165_v24, %v1607_v50  ;;  %654 = sbr.rel (!%p1305_p4) target bundleno = 456 (0x1c8), region = 36 }
 0x18a   : > { %v614_v54 = vadd.f32 %v1611_v25, %v581_v49 }
 0x18b   : > { %645 = vst [vmem:[%s1617_s6 + $0xe8] sm:$0xff] %v613_v17  ;;  %v582_v55 = vmul.f32 %v550_v23, %v1599_v28 }
 0x18c   : > { %646 = vst [vmem:[%s1617_s6 + $0xf0] sm:$0xff] %v614_v54 }
 0x18d   : > { %v615_v56 = vadd.f32 %v1611_v25, %v582_v55 }
 0x18f   : > { %647 = vst [vmem:[%s1617_s6 + $0xf8] sm:$0xff] %v615_v56 }
 0x190   : > { %s1895_s7 = smov (!%p657_p8, %s656_s7), 32 }
 0x191   : > { %s996_s12 = sshll.u32 %s1895_s7, 7 }
 0x192   : > { %p999_p9 = scmp.eq.s32.totalorder %s996_s12, 0 }
 0x193   : > { %s1755_s13 = sshrl.u32 (!%p999_p9), %s1895_s7, 5 }
 0x194   : > { %665 = sbr.rel (%p999_p9) target bundleno = 456 (0x1c8), region = 40  ;;  %p1000_p10 = scmp.le.s32.totalorder (!%p999_p9), %s1755_s13, 0 }
 0x19b   : > { %943 = sbr.rel (%p1000_p10) target bundleno = 435 (0x1b3), region = 116  ;;  %s1886_s14 = smov (!%p1000_p10), %s1749_s11 }
 0x19c   : > { %s1887_s15 = smov (!%p1000_p10), %s1617_s6  ;;  %s1764_s16 = smov (!%p1000_p10), 0  }
 0x19d   : > { %s1766_s18 = smov (!%p1000_p10), 0  }
 0x1a2 LB: >> { %v789_v26 = vld [vmem:[%s1228_s15] sm:$0xff]  ;;  %v791_v19 = vld [vmem:[%s1228_s15 + $0x8] sm:$0xff]  ;;  %v793_v28 = vld [vmem:[%s1228_s15 + $0x10] sm:$0xff]  ;;  %s853_s0 = sadd.s32 1, %s1232_s16  ;;  %s783_s18 = sadd.s32 1, %s1236_s18   ;;  %s1236_s18 = sphi %s1766_s18, %s783_s18   ;;  %s1232_s16 = sphi %s1764_s16, %s1890_s16   ;;  %s1228_s15 = sphi %s1887_s15, %s1889_s15   ;;  %s1224_s14 = sphi %s1886_s14, %s1888_s14  }
 0x1a3   : >> { %790 = vst [vmem:[%s1224_s14] sm:$0xff] %v789_v26  ;;  %792 = vst [vmem:[%s1224_s14 + $0x8] sm:$0xff] %v791_v19  ;;  %v795_v50 = vld [vmem:[%s1228_s15 + $0x18] sm:$0xff]  ;;  %v797_v25 = vld [vmem:[%s1228_s15 + $0x20] sm:$0xff]  ;;  %p854_p11 = scmp.ge.s32.totalorder %s853_s0, %s1755_s13  ;;  %p782_p12 = scmp.ge.s32.totalorder %s783_s18, %s1755_s13 }
 0x1a4   : >> { %794 = vst [vmem:[%s1224_s14 + $0x10] sm:$0xff] %v793_v28  ;;  %v799_v4 = vld [vmem:[%s1228_s15 + $0x28] sm:$0xff]  ;;  %796 = vst [vmem:[%s1224_s14 + $0x18] sm:$0xff] %v795_v50  ;;  %v801_v14 = vld [vmem:[%s1228_s15 + $0x30] sm:$0xff] }
 0x1a5   : >> { %798 = vst [vmem:[%s1224_s14 + $0x20] sm:$0xff] %v797_v25  ;;  %800 = vst [vmem:[%s1224_s14 + $0x28] sm:$0xff] %v799_v4  ;;  %v803_v57 = vld [vmem:[%s1228_s15 + $0x38] sm:$0xff]  ;;  %v805_v58 = vld [vmem:[%s1228_s15 + $0x40] sm:$0xff]  ;;  %s1897_s0 = smov (%p854_p11, %s853_s0), 0 }
 0x1a6   : >> { %802 = vst [vmem:[%s1224_s14 + $0x30] sm:$0xff] %v801_v14  ;;  %804 = vst [vmem:[%s1224_s14 + $0x38] sm:$0xff] %v803_v57  ;;  %v807_v5 = vld [vmem:[%s1228_s15 + $0x48] sm:$0xff]  ;;  %v809_v35 = vld [vmem:[%s1228_s15 + $0x50] sm:$0xff]  ;;  %s1001_s19 = sshll.u32 %s1897_s0, 8  ;;  %s1890_s16 = smov %s1897_s0 }
 0x1a7   : >> { %806 = vst [vmem:[%s1224_s14 + $0x40] sm:$0xff] %v805_v58  ;;  %v811_v62 = vld [vmem:[%s1228_s15 + $0x58] sm:$0xff]  ;;  %808 = vst [vmem:[%s1224_s14 + $0x48] sm:$0xff] %v807_v5  ;;  %v813_v44 = vld [vmem:[%s1228_s15 + $0x60] sm:$0xff]  ;;  %s1822_s20 = scalar_lea.vmem %s1617_s6, %s1001_s19 [#allocation4]   ;;  %s859_s22 = scalar_lea.vmem %s1749_s11, %s1001_s19  }
 0x1a8   : >> { %810 = vst [vmem:[%s1224_s14 + $0x50] sm:$0xff] %v809_v35  ;;  %812 = vst [vmem:[%s1224_s14 + $0x58] sm:$0xff] %v811_v62  ;;  %v815_v63 = vld [vmem:[%s1228_s15 + $0x68] sm:$0xff]  ;;  %v817_v0 = vld [vmem:[%s1228_s15 + $0x70] sm:$0xff] }
 0x1a9   : >> { %814 = vst [vmem:[%s1224_s14 + $0x60] sm:$0xff] %v813_v44  ;;  %816 = vst [vmem:[%s1224_s14 + $0x68] sm:$0xff] %v815_v63  ;;  %v819_v51 = vld [vmem:[%s1228_s15 + $0x78] sm:$0xff]  ;;  %v821_v1 = vld [vmem:[%s1228_s15 + $0x80] sm:$0xff] }
 0x1aa   : >> { %818 = vst [vmem:[%s1224_s14 + $0x70] sm:$0xff] %v817_v0  ;;  %v823_v2 = vld [vmem:[%s1228_s15 + $0x88] sm:$0xff]  ;;  %820 = vst [vmem:[%s1224_s14 + $0x78] sm:$0xff] %v819_v51  ;;  %v825_v16 = vld [vmem:[%s1228_s15 + $0x90] sm:$0xff] }
 0x1ab   : >> { %822 = vst [vmem:[%s1224_s14 + $0x80] sm:$0xff] %v821_v1  ;;  %824 = vst [vmem:[%s1224_s14 + $0x88] sm:$0xff] %v823_v2  ;;  %v827_v27 = vld [vmem:[%s1228_s15 + $0x98] sm:$0xff]  ;;  %v829_v8 = vld [vmem:[%s1228_s15 + $0xa0] sm:$0xff] }
 0x1ac   : >> { %826 = vst [vmem:[%s1224_s14 + $0x90] sm:$0xff] %v825_v16  ;;  %828 = vst [vmem:[%s1224_s14 + $0x98] sm:$0xff] %v827_v27  ;;  %v831_v9 = vld [vmem:[%s1228_s15 + $0xa8] sm:$0xff]  ;;  %v833_v6 = vld [vmem:[%s1228_s15 + $0xb0] sm:$0xff]  ;;  %785 = sbr.rel (!%p782_p12) target bundleno = 418 (0x1a2), region = 122 }
 0x1ad   : >> { %830 = vst [vmem:[%s1224_s14 + $0xa0] sm:$0xff] %v829_v8  ;;  %v835_v7 = vld [vmem:[%s1228_s15 + $0xb8] sm:$0xff]  ;;  %832 = vst [vmem:[%s1224_s14 + $0xa8] sm:$0xff] %v831_v9  ;;  %v837_v45 = vld [vmem:[%s1228_s15 + $0xc0] sm:$0xff] }
 0x1ae   : >> { %834 = vst [vmem:[%s1224_s14 + $0xb0] sm:$0xff] %v833_v6  ;;  %836 = vst [vmem:[%s1224_s14 + $0xb8] sm:$0xff] %v835_v7  ;;  %v839_v32 = vld [vmem:[%s1228_s15 + $0xc8] sm:$0xff]  ;;  %v841_v33 = vld [vmem:[%s1228_s15 + $0xd0] sm:$0xff] }
 0x1af   : >> { %838 = vst [vmem:[%s1224_s14 + $0xc0] sm:$0xff] %v837_v45  ;;  %840 = vst [vmem:[%s1224_s14 + $0xc8] sm:$0xff] %v839_v32  ;;  %v843_v36 = vld [vmem:[%s1228_s15 + $0xd8] sm:$0xff]  ;;  %v845_v52 = vld [vmem:[%s1228_s15 + $0xe0] sm:$0xff] }
 0x1b0   : >> { %842 = vst [vmem:[%s1224_s14 + $0xd0] sm:$0xff] %v841_v33  ;;  %v847_v34 = vld [vmem:[%s1228_s15 + $0xe8] sm:$0xff]  ;;  %844 = vst [vmem:[%s1224_s14 + $0xd8] sm:$0xff] %v843_v36  ;;  %v849_v18 = vld [vmem:[%s1228_s15 + $0xf0] sm:$0xff] }
 0x1b1   : >> { %846 = vst [vmem:[%s1224_s14 + $0xe0] sm:$0xff] %v845_v52  ;;  %848 = vst [vmem:[%s1224_s14 + $0xe8] sm:$0xff] %v847_v34  ;;  %v851_v29 = vld [vmem:[%s1228_s15 + $0xf8] sm:$0xff]  ;;  %s1889_s15 = smov %s1822_s20 }
 0x1b2   : >> { %850 = vst [vmem:[%s1224_s14 + $0xf0] sm:$0xff] %v849_v18  ;;  %852 = vst [vmem:[%s1224_s14 + $0xf8] sm:$0xff] %v851_v29  ;;  %s1888_s14 = smov %s859_s22 }
 0x1b3 PF: > { %s1863_s23 = sand.u32 31, %s1895_s7   ;;  %s1012_s24 = sshll.u32 %s1755_s13, 8 }
 0x1b4   : > { %s864_s25 = scalar_lea.vmem %s1617_s6, %s1012_s24 [#allocation4]   ;;  %s866_s26 = scalar_lea.vmem %s1749_s11, %s1012_s24  }
 0x1b5   : > { %p1006_p13 = scmp.le.s32.totalorder %s1863_s23, 0 }
 0x1b6   : > { %s1238_s27 = smov (!%p1006_p13), %s866_s26   ;;  %s1242_s28 = smov (!%p1006_p13), %s864_s25  }
 0x1b7   : > { %957 = sbr.rel (%p1006_p13) target bundleno = 456 (0x1c8), region = 127  ;;  %s1246_s29 = smov (!%p1006_p13), 0  }
 0x1b8   : > { %s1250_s30 = smov (!%p1006_p13), 0  }
 0x1be LB: >> { %v876_v11 = vld [vmem:[%s1244_s28] sm:$0xff]  ;;  %s878_s4 = sadd.s32 1, %s1248_s29  ;;  %s870_s30 = sadd.s32 1, %s1252_s30   ;;  %s1252_s30 = sphi %s1250_s30, %s870_s30   ;;  %s1248_s29 = sphi %s1246_s29, %s1247_s29   ;;  %s1244_s28 = sphi %s1242_s28, %s883_s28   ;;  %s1240_s27 = sphi %s1238_s27, %s884_s27  }
 0x1bf   : >> { %877 = vst [vmem:[%s1240_s27] sm:$0xff] %v876_v11  ;;  %p879_p0 = scmp.ge.s32.totalorder %s878_s4, %s1863_s23  ;;  %p869_p1 = scmp.ge.s32.totalorder %s870_s30, %s1863_s23 }
 0x1c1   : >> { %s1899_s4 = smov (%p879_p0, %s878_s4), 0  ;;  %872 = sbr.rel (!%p869_p1) target bundleno = 446 (0x1be), region = 133 }
 0x1c2   : >> { %s1007_s5 = sshll.u32 %s1899_s4, 3  ;;  %s1247_s29 = smov %s1899_s4  }
 0x1c3   : >> { %s883_s28 = scalar_lea.vmem %s864_s25, %s1007_s5 [#allocation4]   ;;  %s884_s27 = scalar_lea.vmem %s866_s26, %s1007_s5  }
 0x1c8 PF: > { %p12_p2 = scmp.ge.s32.totalorder %s1295_s1, 5   ;;  %s1891_s16 = smov %s1216_s17 }
 0x1c9   : > { %s1892_s17 = smov %s1303_s21  ;;  %s1893_s18 = smov %s1295_s1 }
 0x1ca   :  { %14 = sbr.rel (!%p12_p2) target bundleno = 5 (0x5), region = 144 }

</bundles_post_ra>
